<compile_context>
chip_gen: v6e
topology: v6e:2x2x1
jax: 0.10.0
libtpu: 0.0.40
codegen_flags: <defaults>
</compile_context>

<pallas_src>
import functools

import jax
import jax.numpy as jnp
from jax.experimental import pallas as pl
from jax.experimental.pallas import tpu as pltpu


def _im2col_3x3(a, masks, *, W, lanes):
    """Build the (9*C, lanes) im2col patch matrix for a 3x3 / pad=1 conv.

    a     : (C, lanes)  activation, flattened (per-image) spatial on lanes,
                        Nb images folded side by side (lanes = Nb * H * W).
    masks : (9, lanes)  f32 validity mask per tap (kills halo + cross-image
                        roll wrap-around).

    Row order is (kh, kw, c), matching weights repacked
    (O,I,3,3) -> (O,3,3,I) -> (O, 9*I).  Result is bf16 for the MXU.
    """
    taps = []
    for kh in range(3):
        for kw in range(3):
            t = kh * 3 + kw
            dy, dx = kh - 1, kw - 1
            off = dy * W + dx  # source flat offset for this tap
            # shifted[p] == a[(p + off) mod lanes]; wrap-around killed by mask.
            shifted = a if off == 0 else pltpu.roll(a, shift=(-off) % lanes, axis=1)
            taps.append(shifted * masks[t:t + 1])          # f32 masking (VPU)
    # Single bf16 cast of the whole matrix (MXU operand); accumulate stays f32.
    return jnp.concatenate(taps, axis=0).astype(jnp.bfloat16)


def _fused_unet_conv2_kernel(x_ref, mask_ref, w1_ref, b1_ref, w2_ref, b2_ref,
                             o_ref, *, W):
    """One slab of Nb folded batch images per grid step.

    x_ref    : (Cin,  lanes)    input slab, spatial (x Nb images) on lanes
    mask_ref : (9,    lanes)    f32 tap-validity masks (grid-invariant, VMEM-resident)
    w1_ref   : (Cout, 9*Cin)    conv1 weights, im2col-packed, bf16
    b1_ref   : (Cout, 1)        conv1 bias, f32
    w2_ref   : (Cout, 9*Cout)   conv2 weights, im2col-packed, bf16
    b2_ref   : (Cout, 1)        conv2 bias, f32
    o_ref    : (Cout, lanes)    output slab (lane-dense store)
    """
    lanes = x_ref.shape[-1]
    masks = mask_ref[...]                                   # (9, lanes) f32
    x = x_ref[...].astype(jnp.float32)                      # (Cin, lanes)

    # conv1 + ReLU : one MXU matmul, contraction dim 9*Cin, bf16 operands.
    p1 = _im2col_3x3(x, masks, W=W, lanes=lanes)            # bf16 (9*Cin, lanes)
    h1 = jnp.dot(w1_ref[...], p1, preferred_element_type=jnp.float32)
    h1 = jnp.maximum(h1 + b1_ref[...], 0.0)                 # f32 (Cout, lanes)

    # conv2 + ReLU : intermediate h1 never leaves VMEM / vregs.
    p2 = _im2col_3x3(h1, masks, W=W, lanes=lanes)           # bf16 (9*Cout, lanes)
    h2 = jnp.dot(w2_ref[...], p2, preferred_element_type=jnp.float32)
    h2 = jnp.maximum(h2 + b2_ref[...], 0.0)                 # f32 (Cout, lanes)

    o_ref[...] = h2.astype(o_ref.dtype)


def pack_params(params):
    """One-time parameter repack (hoisted out of the per-call wrapper).

    Weights -> (Cout, 9*C) im2col layout, bf16 (MXU operand); biases -> (Cout,1) f32.
    """
    Cout, Cin = params["w1"].shape[0], params["w1"].shape[1]
    w1 = jnp.transpose(params["w1"], (0, 2, 3, 1)).reshape(Cout, 9 * Cin)
    w2 = jnp.transpose(params["w2"], (0, 2, 3, 1)).reshape(Cout, 9 * Cout)
    return {
        "w1": w1.astype(jnp.bfloat16),
        "w2": w2.astype(jnp.bfloat16),
        "b1": params["b1"].reshape(Cout, 1).astype(jnp.float32),
        "b2": params["b2"].reshape(Cout, 1).astype(jnp.float32),
    }


def _choose_batch_fold(N, HW, max_lanes=4096):
    """Largest batch fold Nb (divisor of N) s.t. lanes stay bounded and the grid
    keeps >= 2 steps (prefer an even step count for v7x's 2 TensorCores)."""
    best, best_even = 1, None
    for nb in range(1, N + 1):
        if N % nb:
            continue
        steps = N // nb
        if nb * HW > max_lanes:
            continue
        if N >= 2 and steps < 2:
            continue
        best = nb
        if steps % 2 == 0:
            best_even = nb
    return best_even if best_even is not None else best


@jax.jit
def unet_conv2_forward(x, packed):
    """unetConv2.forward (is_batchnorm=False, use_se=False). NCHW in / NCHW out.

    `packed` comes from pack_params() (call once per parameter set)."""
    N, Cin, H, W = x.shape
    Cout = packed["w1"].shape[0]
    HW = H * W
    assert HW % 128 == 0, "lane-dense layout assumes H*W to be a multiple of 128"

    nb = _choose_batch_fold(N, HW)
    steps = N // nb
    lanes = nb * HW

    # Per-tap validity masks, computed once on host, tiled per folded image.
    yy = jnp.arange(HW, dtype=jnp.int32) // W
    xx = jnp.arange(HW, dtype=jnp.int32) % W
    rows = []
    for kh in range(3):
        for kw in range(3):
            dy, dx = kh - 1, kw - 1
            rows.append((yy + dy >= 0) & (yy + dy < H) &
                        (xx + dx >= 0) & (xx + dx < W))
    mask = jnp.stack(rows).astype(jnp.float32)               # (9, HW)
    mask = jnp.tile(mask, (1, nb))                            # (9, lanes)

    # Channels on sublanes, flattened (batch x spatial) on lanes.
    x_flat = jnp.transpose(x, (1, 0, 2, 3)).reshape(Cin, N * HW)

    kernel = functools.partial(_fused_unet_conv2_kernel, W=W)

    itemsize = jnp.dtype(x.dtype).itemsize
    cost = pl.CostEstimate(
        flops=2 * N * HW * 9 * (Cin * Cout + Cout * Cout),
        transcendentals=0,
        bytes_accessed=(N * Cin * HW + N * Cout * HW) * itemsize
        + int(packed["w1"].size + packed["w2"].size) * 2
        + int(packed["b1"].size + packed["b2"].size) * 4
        + int(mask.size) * 4,
    )

    # Rough per-step VMEM estimate (double-buffered I/O + im2col intermediates);
    # raise the scoped limit with margin, capped with headroom below physical
    # VMEM on every generation (v7x physical = 64 MiB).
    vmem_est = (2 * (Cin + Cout) * lanes * 4          # x / out blocks (dbl-buffered)
                + 2 * 9 * lanes * 4                   # mask block
                + 9 * (Cin + Cout) * lanes * (4 + 2)  # f32 taps + bf16 im2col
                + 2 * Cout * lanes * 4                # h1 / h2
                + 2 * (packed["w1"].size + packed["w2"].size) * 2
                + 2 * (packed["b1"].size + packed["b2"].size) * 4)
    vmem_limit = int(min(max(2 * vmem_est, 16 * 1024 * 1024), 48 * 1024 * 1024))

    out_flat = pl.pallas_call(
        kernel,
        out_shape=jax.ShapeDtypeStruct((Cout, N * HW), x.dtype),
        grid_spec=pltpu.PrefetchScalarGridSpec(
            num_scalar_prefetch=0,
            grid=(steps,),
            in_specs=[
                pl.BlockSpec((Cin, lanes), lambda g: (0, g)),
                # Constant block index -> masks/weights/biases stay
                # VMEM-resident across the batch grid (no per-step re-DMA).
                pl.BlockSpec((9, lanes), lambda g: (0, 0)),
                pl.BlockSpec((Cout, 9 * Cin), lambda g: (0, 0)),
                pl.BlockSpec((Cout, 1), lambda g: (0, 0)),
                pl.BlockSpec((Cout, 9 * Cout), lambda g: (0, 0)),
                pl.BlockSpec((Cout, 1), lambda g: (0, 0)),
            ],
            out_specs=pl.BlockSpec((Cout, lanes), lambda g: (0, g)),
        ),
        compiler_params=pltpu.CompilerParams(
            dimension_semantics=("parallel",),
            vmem_limit_bytes=vmem_limit),
        cost_estimate=cost,
    )(x_flat, mask, packed["w1"], packed["b1"], packed["w2"], packed["b2"])

    # Back to NCHW (trailing-dim reshape + one transpose).
    return jnp.transpose(out_flat.reshape(Cout, N, H, W), (1, 0, 2, 3))


def _reference_forward(x, params):
    """Pure-JAX reference (lax conv, f32) for correctness check."""
    def conv(x, w, b):
        y = jax.lax.conv_general_dilated(
            x, w, window_strides=(1, 1), padding="SAME",
            dimension_numbers=("NCHW", "OIHW", "NCHW"))
        return jnp.maximum(y + b[None, :, None, None], 0.0)
    return conv(conv(x, params["w1"], params["b1"]), params["w2"], params["b2"])


if __name__ == "__main__":
    # Small shapes consistent with the module: batch=2, in_size=4, out_size=8, 16x16.
    N, Cin, Cout, H, W = 2, 4, 8, 16, 16

    key = jax.random.PRNGKey(0)
    kx, kw1, kb1, kw2, kb2 = jax.random.split(key, 5)

    x = jax.random.normal(kx, (N, Cin, H, W), dtype=jnp.float32)
    params = {
        "w1": jax.random.normal(kw1, (Cout, Cin, 3, 3), dtype=jnp.float32) * 0.1,
        "b1": jax.random.normal(kb1, (Cout,), dtype=jnp.float32) * 0.1,
        "w2": jax.random.normal(kw2, (Cout, Cout, 3, 3), dtype=jnp.float32) * 0.1,
        "b2": jax.random.normal(kb2, (Cout,), dtype=jnp.float32) * 0.1,
    }

    packed = pack_params(params)  # one-time repack, hoisted out of forward

    out = jax.block_until_ready(unet_conv2_forward(x, packed))
    ref = jax.block_until_ready(_reference_forward(x, params))

    assert out.shape == (N, Cout, H, W), out.shape
    # bf16 MXU operands (f32 accumulate) -> slightly looser tolerance vs f32 ref.
    assert jnp.allclose(out, ref, atol=2e-2, rtol=2e-2), \
        f"max abs diff {jnp.max(jnp.abs(out - ref))}"

    print("KERNEL_OK")
</pallas_src>

<mosaic_0001>
module attributes {stable_mosaic.version = 11 : i64} {
  func.func @_fused_unet_conv2_kernel(%arg0: i32, %arg1: memref<4x256xf32, #tpu.memory_space<vmem>>, %arg2: memref<9x256xf32, #tpu.memory_space<vmem>>, %arg3: memref<8x36xbf16, #tpu.memory_space<vmem>>, %arg4: memref<8x1xf32, #tpu.memory_space<vmem>>, %arg5: memref<8x72xbf16, #tpu.memory_space<vmem>>, %arg6: memref<8x1xf32, #tpu.memory_space<vmem>>, %arg7: memref<8x256xf32, #tpu.memory_space<vmem>>) attributes {dimension_semantics = [#tpu.dimension_semantics<parallel>], iteration_bounds = array<i64: 2>, scalar_prefetch = 0 : i64, scratch_operands = 0 : i64, tpu.core_type = #tpu.core_type<tc>, window_params = [{transform_indices = @transform_0, window_bounds = array<i64: 4, 256>}, {pipeline_mode = #tpu.pipeline_mode<synchronous>, transform_indices = @transform_1, window_bounds = array<i64: 9, 256>}, {pipeline_mode = #tpu.pipeline_mode<synchronous>, transform_indices = @transform_2, window_bounds = array<i64: 8, 36>}, {pipeline_mode = #tpu.pipeline_mode<synchronous>, transform_indices = @transform_3, window_bounds = array<i64: 8, 1>}, {pipeline_mode = #tpu.pipeline_mode<synchronous>, transform_indices = @transform_4, window_bounds = array<i64: 8, 72>}, {pipeline_mode = #tpu.pipeline_mode<synchronous>, transform_indices = @transform_5, window_bounds = array<i64: 8, 1>}, {transform_indices = @transform_6, window_bounds = array<i64: 8, 256>}]} {
    %c0 = arith.constant 0 : index
    %c0_0 = arith.constant 0 : index
    %0 = vector.load %arg2[%c0, %c0_0] : memref<9x256xf32, #tpu.memory_space<vmem>>, vector<9x256xf32>
    %c0_1 = arith.constant 0 : index
    %c0_2 = arith.constant 0 : index
    %1 = vector.load %arg1[%c0_1, %c0_2] : memref<4x256xf32, #tpu.memory_space<vmem>>, vector<4x256xf32>
    %c17_i32 = arith.constant 17 : i32
    %2 = tpu.dynamic_rotate %1 by %c17_i32 dim 1 : vector<4x256xf32>, i32 -> vector<4x256xf32>
    %3 = vector.extract_strided_slice %0 {offsets = [0, 0], sizes = [1, 256], strides = [1, 1]} : vector<9x256xf32> to vector<1x256xf32>
    %4 = vector.broadcast %3 : vector<1x256xf32> to vector<4x256xf32>
    %5 = arith.mulf %2, %4 : vector<4x256xf32>
    %c16_i32 = arith.constant 16 : i32
    %6 = tpu.dynamic_rotate %1 by %c16_i32 dim 1 : vector<4x256xf32>, i32 -> vector<4x256xf32>
    %7 = vector.extract_strided_slice %0 {offsets = [1, 0], sizes = [1, 256], strides = [1, 1]} : vector<9x256xf32> to vector<1x256xf32>
    %8 = vector.broadcast %7 : vector<1x256xf32> to vector<4x256xf32>
    %9 = arith.mulf %6, %8 : vector<4x256xf32>
    %c15_i32 = arith.constant 15 : i32
    %10 = tpu.dynamic_rotate %1 by %c15_i32 dim 1 : vector<4x256xf32>, i32 -> vector<4x256xf32>
    %11 = vector.extract_strided_slice %0 {offsets = [2, 0], sizes = [1, 256], strides = [1, 1]} : vector<9x256xf32> to vector<1x256xf32>
    %12 = vector.broadcast %11 : vector<1x256xf32> to vector<4x256xf32>
    %13 = arith.mulf %10, %12 : vector<4x256xf32>
    %c1_i32 = arith.constant 1 : i32
    %14 = tpu.dynamic_rotate %1 by %c1_i32 dim 1 : vector<4x256xf32>, i32 -> vector<4x256xf32>
    %15 = vector.extract_strided_slice %0 {offsets = [3, 0], sizes = [1, 256], strides = [1, 1]} : vector<9x256xf32> to vector<1x256xf32>
    %16 = vector.broadcast %15 : vector<1x256xf32> to vector<4x256xf32>
    %17 = arith.mulf %14, %16 : vector<4x256xf32>
    %18 = vector.extract_strided_slice %0 {offsets = [4, 0], sizes = [1, 256], strides = [1, 1]} : vector<9x256xf32> to vector<1x256xf32>
    %19 = vector.broadcast %18 : vector<1x256xf32> to vector<4x256xf32>
    %20 = arith.mulf %1, %19 : vector<4x256xf32>
    %c255_i32 = arith.constant 255 : i32
    %21 = tpu.dynamic_rotate %1 by %c255_i32 dim 1 : vector<4x256xf32>, i32 -> vector<4x256xf32>
    %22 = vector.extract_strided_slice %0 {offsets = [5, 0], sizes = [1, 256], strides = [1, 1]} : vector<9x256xf32> to vector<1x256xf32>
    %23 = vector.broadcast %22 : vector<1x256xf32> to vector<4x256xf32>
    %24 = arith.mulf %21, %23 : vector<4x256xf32>
    %c241_i32 = arith.constant 241 : i32
    %25 = tpu.dynamic_rotate %1 by %c241_i32 dim 1 : vector<4x256xf32>, i32 -> vector<4x256xf32>
    %26 = vector.extract_strided_slice %0 {offsets = [6, 0], sizes = [1, 256], strides = [1, 1]} : vector<9x256xf32> to vector<1x256xf32>
    %27 = vector.broadcast %26 : vector<1x256xf32> to vector<4x256xf32>
    %28 = arith.mulf %25, %27 : vector<4x256xf32>
    %c240_i32 = arith.constant 240 : i32
    %29 = tpu.dynamic_rotate %1 by %c240_i32 dim 1 : vector<4x256xf32>, i32 -> vector<4x256xf32>
    %30 = vector.extract_strided_slice %0 {offsets = [7, 0], sizes = [1, 256], strides = [1, 1]} : vector<9x256xf32> to vector<1x256xf32>
    %31 = vector.broadcast %30 : vector<1x256xf32> to vector<4x256xf32>
    %32 = arith.mulf %29, %31 : vector<4x256xf32>
    %c239_i32 = arith.constant 239 : i32
    %33 = tpu.dynamic_rotate %1 by %c239_i32 dim 1 : vector<4x256xf32>, i32 -> vector<4x256xf32>
    %34 = vector.extract_strided_slice %0 {offsets = [8, 0], sizes = [1, 256], strides = [1, 1]} : vector<9x256xf32> to vector<1x256xf32>
    %35 = vector.broadcast %34 : vector<1x256xf32> to vector<4x256xf32>
    %36 = arith.mulf %33, %35 : vector<4x256xf32>
    %37 = tpu.concatenate %5, %9, %13, %17, %20, %24, %28, %32, %36 in 0 : vector<4x256xf32>, vector<4x256xf32>, vector<4x256xf32>, vector<4x256xf32>, vector<4x256xf32>, vector<4x256xf32>, vector<4x256xf32>, vector<4x256xf32>, vector<4x256xf32> -> vector<36x256xf32>
    %38 = arith.truncf %37 : vector<36x256xf32> to vector<36x256xbf16>
    %c0_3 = arith.constant 0 : index
    %c0_4 = arith.constant 0 : index
    %39 = vector.load %arg3[%c0_3, %c0_4] : memref<8x36xbf16, #tpu.memory_space<vmem>>, vector<8x36xbf16>
    %cst = arith.constant dense<0.000000e+00> : vector<8x256xf32>
    %40 = tpu.matmul %39, %38, %cst {dimension_numbers = #tpu.dot_dimension_numbers<[1], [0], [0], [1], [0, 0, 1, 1], [], []>} : vector<8x36xbf16>, vector<36x256xbf16>, vector<8x256xf32> -> vector<8x256xf32>
    %c0_5 = arith.constant 0 : index
    %c0_6 = arith.constant 0 : index
    %41 = vector.load %arg4[%c0_5, %c0_6] : memref<8x1xf32, #tpu.memory_space<vmem>>, vector<8x1xf32>
    %42 = vector.broadcast %41 : vector<8x1xf32> to vector<8x256xf32>
    %43 = arith.addf %40, %42 : vector<8x256xf32>
    %cst_7 = arith.constant 0.000000e+00 : f32
    %44 = vector.broadcast %cst_7 : f32 to vector<8x256xf32>
    %45 = arith.maximumf %43, %44 : vector<8x256xf32>
    %c17_i32_8 = arith.constant 17 : i32
    %46 = tpu.dynamic_rotate %45 by %c17_i32_8 dim 1 : vector<8x256xf32>, i32 -> vector<8x256xf32>
    %47 = vector.extract_strided_slice %0 {offsets = [0, 0], sizes = [1, 256], strides = [1, 1]} : vector<9x256xf32> to vector<1x256xf32>
    %48 = vector.broadcast %47 : vector<1x256xf32> to vector<8x256xf32>
    %49 = arith.mulf %46, %48 : vector<8x256xf32>
    %c16_i32_9 = arith.constant 16 : i32
    %50 = tpu.dynamic_rotate %45 by %c16_i32_9 dim 1 : vector<8x256xf32>, i32 -> vector<8x256xf32>
    %51 = vector.extract_strided_slice %0 {offsets = [1, 0], sizes = [1, 256], strides = [1, 1]} : vector<9x256xf32> to vector<1x256xf32>
    %52 = vector.broadcast %51 : vector<1x256xf32> to vector<8x256xf32>
    %53 = arith.mulf %50, %52 : vector<8x256xf32>
    %c15_i32_10 = arith.constant 15 : i32
    %54 = tpu.dynamic_rotate %45 by %c15_i32_10 dim 1 : vector<8x256xf32>, i32 -> vector<8x256xf32>
    %55 = vector.extract_strided_slice %0 {offsets = [2, 0], sizes = [1, 256], strides = [1, 1]} : vector<9x256xf32> to vector<1x256xf32>
    %56 = vector.broadcast %55 : vector<1x256xf32> to vector<8x256xf32>
    %57 = arith.mulf %54, %56 : vector<8x256xf32>
    %c1_i32_11 = arith.constant 1 : i32
    %58 = tpu.dynamic_rotate %45 by %c1_i32_11 dim 1 : vector<8x256xf32>, i32 -> vector<8x256xf32>
    %59 = vector.extract_strided_slice %0 {offsets = [3, 0], sizes = [1, 256], strides = [1, 1]} : vector<9x256xf32> to vector<1x256xf32>
    %60 = vector.broadcast %59 : vector<1x256xf32> to vector<8x256xf32>
    %61 = arith.mulf %58, %60 : vector<8x256xf32>
    %62 = vector.extract_strided_slice %0 {offsets = [4, 0], sizes = [1, 256], strides = [1, 1]} : vector<9x256xf32> to vector<1x256xf32>
    %63 = vector.broadcast %62 : vector<1x256xf32> to vector<8x256xf32>
    %64 = arith.mulf %45, %63 : vector<8x256xf32>
    %c255_i32_12 = arith.constant 255 : i32
    %65 = tpu.dynamic_rotate %45 by %c255_i32_12 dim 1 : vector<8x256xf32>, i32 -> vector<8x256xf32>
    %66 = vector.extract_strided_slice %0 {offsets = [5, 0], sizes = [1, 256], strides = [1, 1]} : vector<9x256xf32> to vector<1x256xf32>
    %67 = vector.broadcast %66 : vector<1x256xf32> to vector<8x256xf32>
    %68 = arith.mulf %65, %67 : vector<8x256xf32>
    %c241_i32_13 = arith.constant 241 : i32
    %69 = tpu.dynamic_rotate %45 by %c241_i32_13 dim 1 : vector<8x256xf32>, i32 -> vector<8x256xf32>
    %70 = vector.extract_strided_slice %0 {offsets = [6, 0], sizes = [1, 256], strides = [1, 1]} : vector<9x256xf32> to vector<1x256xf32>
    %71 = vector.broadcast %70 : vector<1x256xf32> to vector<8x256xf32>
    %72 = arith.mulf %69, %71 : vector<8x256xf32>
    %c240_i32_14 = arith.constant 240 : i32
    %73 = tpu.dynamic_rotate %45 by %c240_i32_14 dim 1 : vector<8x256xf32>, i32 -> vector<8x256xf32>
    %74 = vector.extract_strided_slice %0 {offsets = [7, 0], sizes = [1, 256], strides = [1, 1]} : vector<9x256xf32> to vector<1x256xf32>
    %75 = vector.broadcast %74 : vector<1x256xf32> to vector<8x256xf32>
    %76 = arith.mulf %73, %75 : vector<8x256xf32>
    %c239_i32_15 = arith.constant 239 : i32
    %77 = tpu.dynamic_rotate %45 by %c239_i32_15 dim 1 : vector<8x256xf32>, i32 -> vector<8x256xf32>
    %78 = vector.extract_strided_slice %0 {offsets = [8, 0], sizes = [1, 256], strides = [1, 1]} : vector<9x256xf32> to vector<1x256xf32>
    %79 = vector.broadcast %78 : vector<1x256xf32> to vector<8x256xf32>
    %80 = arith.mulf %77, %79 : vector<8x256xf32>
    %81 = tpu.concatenate %49, %53, %57, %61, %64, %68, %72, %76, %80 in 0 : vector<8x256xf32>, vector<8x256xf32>, vector<8x256xf32>, vector<8x256xf32>, vector<8x256xf32>, vector<8x256xf32>, vector<8x256xf32>, vector<8x256xf32>, vector<8x256xf32> -> vector<72x256xf32>
    %82 = arith.truncf %81 : vector<72x256xf32> to vector<72x256xbf16>
    %c0_16 = arith.constant 0 : index
    %c0_17 = arith.constant 0 : index
    %83 = vector.load %arg5[%c0_16, %c0_17] : memref<8x72xbf16, #tpu.memory_space<vmem>>, vector<8x72xbf16>
    %cst_18 = arith.constant dense<0.000000e+00> : vector<8x256xf32>
    %84 = tpu.matmul %83, %82, %cst_18 {dimension_numbers = #tpu.dot_dimension_numbers<[1], [0], [0], [1], [0, 0, 1, 1], [], []>} : vector<8x72xbf16>, vector<72x256xbf16>, vector<8x256xf32> -> vector<8x256xf32>
    %c0_19 = arith.constant 0 : index
    %c0_20 = arith.constant 0 : index
    %85 = vector.load %arg6[%c0_19, %c0_20] : memref<8x1xf32, #tpu.memory_space<vmem>>, vector<8x1xf32>
    %86 = vector.broadcast %85 : vector<8x1xf32> to vector<8x256xf32>
    %87 = arith.addf %84, %86 : vector<8x256xf32>
    %cst_21 = arith.constant 0.000000e+00 : f32
    %88 = vector.broadcast %cst_21 : f32 to vector<8x256xf32>
    %89 = arith.maximumf %87, %88 : vector<8x256xf32>
    %c0_22 = arith.constant 0 : index
    %c0_23 = arith.constant 0 : index
    %90 = vector.load %arg7[%c0_22, %c0_23] : memref<8x256xf32, #tpu.memory_space<vmem>>, vector<8x256xf32>
    tpu.vector_store %arg7[%c0_22, %c0_23], %89 {strides = array<i32>} : memref<8x256xf32, #tpu.memory_space<vmem>>, vector<8x256xf32>,
    return
  }
  func.func @transform_0(%arg0: i32) -> (i32, i32) {
    %c0_i32 = arith.constant 0 : i32
    %c0_i32_0 = arith.constant 0 : i32
    return %c0_i32, %arg0 : i32, i32
  }
  func.func @transform_1(%arg0: i32) -> (i32, i32) {
    %c0_i32 = arith.constant 0 : i32
    %c0_i32_0 = arith.constant 0 : i32
    %c0_i32_1 = arith.constant 0 : i32
    return %c0_i32, %c0_i32_0 : i32, i32
  }
  func.func @transform_2(%arg0: i32) -> (i32, i32) {
    %c0_i32 = arith.constant 0 : i32
    %c0_i32_0 = arith.constant 0 : i32
    %c0_i32_1 = arith.constant 0 : i32
    return %c0_i32, %c0_i32_0 : i32, i32
  }
  func.func @transform_3(%arg0: i32) -> (i32, i32) {
    %c0_i32 = arith.constant 0 : i32
    %c0_i32_0 = arith.constant 0 : i32
    %c0_i32_1 = arith.constant 0 : i32
    return %c0_i32, %c0_i32_0 : i32, i32
  }
  func.func @transform_4(%arg0: i32) -> (i32, i32) {
    %c0_i32 = arith.constant 0 : i32
    %c0_i32_0 = arith.constant 0 : i32
    %c0_i32_1 = arith.constant 0 : i32
    return %c0_i32, %c0_i32_0 : i32, i32
  }
  func.func @transform_5(%arg0: i32) -> (i32, i32) {
    %c0_i32 = arith.constant 0 : i32
    %c0_i32_0 = arith.constant 0 : i32
    %c0_i32_1 = arith.constant 0 : i32
    return %c0_i32, %c0_i32_0 : i32, i32
  }
  func.func @transform_6(%arg0: i32) -> (i32, i32) {
    %c0_i32 = arith.constant 0 : i32
    %c0_i32_0 = arith.constant 0 : i32
    return %c0_i32, %arg0 : i32, i32
  }
}

</mosaic_0001>

<bundles_post_ra>
// kernel: unet_conv2_forward.1
= control target key start
LH: loop header
LB: loop body
LE: loop exit
PB: predicated region body
PF: predicated region fallthrough
CT: control target
= control target key end

     0   :  { %s800_s21 = smov 0   ;;  %s1065_s0 = inlined_call_operand.vmem [shape: f32[4,512], index: 0, kind: input, shape index: {}]   ;;  %s1066_s1 = inlined_call_operand.vmem [shape: f32[9,256], index: 1, kind: input, shape index: {}]   ;;  %s1067_s2 = inlined_call_operand.vmem [shape: bf16[8,36], index: 2, kind: input, shape index: {}]   ;;  %s1068_s3 = inlined_call_operand.vmem [shape: f32[8,1], index: 3, kind: input, shape index: {}]   ;;  %s1069_s4 = inlined_call_operand.vmem [shape: bf16[8,72], index: 4, kind: input, shape index: {}]   ;;  %s1070_s5 = inlined_call_operand.vmem [shape: f32[8,1], index: 5, kind: input, shape index: {}]   ;;  %s1071_s6 = inlined_call_operand.vmem [shape: f32[8,512], index: 6, kind: output, shape index: {}]  }
   0x1 LB: > { %s712_s22 = sadd.s32 4294967295, %s754_s21   ;;  %p716_p0 = scmp.ge.s32.totalorder %s754_s21, 1  ;;  %s754_s21 = sphi %s800_s21, %s16_s21  }
   0x2   : > { %p213_p1 = scmp.lt.s32.totalorder %s754_s21, 3 }
   0x4   : > { %p214_p2 = pnand %p716_p0, %p213_p1 }
   0x5   : > { %s717_s23 = sshll.u32 (!%p214_p2), %s712_s22, 1  ;;  %s756_s28 = smov (!%p214_p2), 127  }
   0x6   : > { %217 = sbr.rel (%p214_p2) target bundleno = 721 (0x2d1), region = 44  ;;  %p244_p3 = scmp.lt.s32.totalorder (!%p214_p2), %s717_s23, 3 }
   0x7   : > { %s757_s29 = smov (!%p214_p2), 111   ;;  %s758_s30 = smov (!%p214_p2), 112  }
   0x8   : > { %s759_s7 = smov (!%p214_p2), 113   ;;  %s760_s8 = smov (!%p214_p2), 16  }
   0x9   : > { %s761_s9 = smov (!%p214_p2), 1   ;;  %s763_s10 = smov (!%p214_p2), 17  }
   0xa   : > { %s764_s11 = smov (!%p214_p2), 15  }
   0xb   : > { %s1073_s23 = smov (!%p244_p3, %s717_s23), 3  ;;  %v762_v2 = vmov 0   ;;  %v458_v3 = vld [vmem:[%s1068_s3] sm:$0xff]  ;;  %v268_v4 = vlaneseq  ;;  %v844_v8 = vld [vmem:[%s1066_s1 + $0x8] sm:$0xff]  ;;  %v881_v26 = vld [vmem:[%s1066_s1 + $0x10] ss:$0 sm:$0xff] }
   0xc   : > { %s718_s24 = sshll.u32 %s1073_s23, 2  ;;  %507 = vmatprep.mubr.bf16.mxu0 %v762_v2  ;;  %746 = vset.pattern.permute.xlu0 %v762_v2  ;;  %v839_v7 = vld [vmem:[%s1066_s1] sm:$0xff]  ;;  %v887_v27 = vld [vmem:[%s1066_s1 + $0x18] ss:$0 sm:$0xff]  ;;  %vm468_vm4 = vcmask 1041408   ;;  %vm442_vm5 = vcmask 1043456  }
   0xd   : > { %s247_s27 = scalar_lea.vmem %s1065_s0, %s718_s24  ;;  %643 = vmatprep.mubr.bf16.mxu1 %v762_v2  ;;  %v833_v5 = vshrl.u32 %v268_v4, 7  ;;  %v846_v9 = vand.u32 127, %v268_v4  ;;  %vm464_vm10 = vcmask 293888   ;;  %vm601_vm11 = vcmask 588800  }
   0xe   : > { %v260_v0 = vld [vmem:[%s247_s27] sm:$0xff] }
   0xf   : > { %347 = vrot.lane.b32.xlu1 %v260_v0, %s756_s28  ;;  %398 = vrot.lane.b32.xlu0 %v260_v0, %s757_s29  ;;  %v262_v1 = vcombine.high %v260_v0, %v260_v0  ;;  %v336_v6 = vsub.s32 4, %v833_v5  ;;  %v356_v14 = vsub.s32 5, %v833_v5  ;;  %vm351_vm0 = vcmp.lt.s32.totalorder %v846_v9, 127 }
  0x10   : > { %v390_v15 = vsub.s32 7, %v833_v5  ;;  %v373_v21 = vsub.s32 6, %v833_v5  ;;  %vm385_vm1 = vcmp.lt.s32.totalorder %v846_v9, 112  ;;  %vm402_vm2 = vcmp.lt.s32.totalorder %v846_v9, 111 }
  0x11   : > { %v849_v10 = vrot.slane %v839_v7, %v336_v6  ;;  %v852_v11 = vrot.slane %v844_v8, %v336_v6  ;;  %v860_v18 = vrot.slane %v839_v7, %v356_v14  ;;  %v863_v19 = vrot.slane %v844_v8, %v356_v14 }
  0x12   : > { %v872_v24 = vrot.slane %v839_v7, %v390_v15  ;;  %v875_v25 = vrot.slane %v844_v8, %v390_v15  ;;  %vm368_vm3 = vcmp.lt.s32.totalorder %v846_v9, 113  ;;  %v892_v33 = vrot.slane %v839_v7, %v373_v21 }
  0x13   : > { %381 = vrot.lane.b32.xlu0 %v260_v0, %s758_s30  ;;  %349 = vrot.lane.b32.xlu1 %v262_v1, %s756_s28  ;;  %v344_v16 = vcombine.low %v849_v10, %v852_v11  ;;  %v895_v34 = vrot.slane %v844_v8, %v373_v21  ;;  %v292_v63 = vsub.s32 1, %v833_v5  ;;  %v326_v2 = vsub.s32 3, %v833_v5 }
  0x14   : > { %vm287_vm6 = vcmp.lt.s32.totalorder %v846_v9, 16  ;;  %vm321_vm7 = vcmp.lt.s32.totalorder %v846_v9, 1  ;;  %v275_v6 = vsub.s32 0, %v833_v5  ;;  %vm270_vm8 = vcmp.lt.s32.totalorder %v846_v9, 17 }
  0x15   : > { %v346_v28 = vmul.f32 %v344_v16, %v260_v0  ;;  %v933_v14 = vrot.slane %v839_v7, %v326_v2  ;;  %v936_v15 = vrot.slane %v844_v8, %v326_v2  ;;  %vm304_vm9 = vcmp.lt.s32.totalorder %v846_v9, 15  ;;  %v595_v2 = vld [vmem:[%s1070_s5] sm:$0xff] }
  0x17   : > { %383 = vrot.lane.b32.xlu1 %v262_v1, %s758_s30  ;;  %400 = vrot.lane.b32.xlu0 %v262_v1, %s757_s29  ;;  %v428_v43 = vcombine.high %v346_v28, %v346_v28 }
  0x1b   : > { %366 = vrot.lane.b32.xlu1 %v262_v1, %s759_s7  ;;  %364 = vrot.lane.b32.xlu0 %v260_v0, %s759_s7 }
  0x1f   : > { %285 = vrot.lane.b32.xlu1 %v262_v1, %s760_s8  ;;  %283 = vrot.lane.b32.xlu0 %v260_v0, %s760_s8 }
  0x23   : > { %319 = vrot.lane.b32.xlu1 %v262_v1, %s761_s9  ;;  %317 = vrot.lane.b32.xlu0 %v260_v0, %s761_s9 }
  0x27   : > { %266 = vrot.lane.b32.xlu1 %v262_v1, %s763_s10  ;;  %264 = vrot.lane.b32.xlu0 %v260_v0, %s763_s10 }
  0x2b   : > { %302 = vrot.lane.b32.xlu1 %v262_v1, %s764_s11  ;;  %300 = vrot.lane.b32.xlu0 %v260_v0, %s764_s11 }
  0x2f   : > { %461 = vperm.xlu0 %746, %v458_v3  }
  0x81   : > { %v348_v12 = vpop.permute.xlu1 %347  ;;  %v399_v13 = vpop.permute.xlu0 %398 }
  0x85   : > { %v382_v17 = vpop.permute.xlu0 %381  ;;  %v350_v20 = vpop.permute.xlu1 %349 }
  0x86   : > { %v352_v22 = vsel %vm351_vm0, %v348_v12, %v350_v20  ;;  %v353_v23 = vsel %vm351_vm0, %v350_v20, %v348_v12  ;;  %v927_v12 = vrot.slane %v839_v7, %v292_v63  ;;  %v309_v20 = vsub.s32 2, %v833_v5 }
  0x87   : > { %v362_v29 = vmul.f32 %v860_v18, %v352_v22  ;;  %v363_v30 = vmul.f32 %v863_v19, %v353_v23 }
  0x89   : > { %v384_v31 = vpop.permute.xlu1 %383  ;;  %v401_v32 = vpop.permute.xlu0 %400  ;;  %v432_v44 = vrot.slane %v362_v29, 4  ;;  %v433_v45 = vrot.slane %v363_v30, 4  ;;  %v952_v29 = vrot.slane %v844_v8, %v275_v6 }
  0x8a   : > { %v386_v35 = vsel %vm385_vm1, %v382_v17, %v384_v31  ;;  %v387_v36 = vsel %vm385_vm1, %v384_v31, %v382_v17  ;;  %v403_v37 = vsel %vm402_vm2, %v399_v13, %v401_v32  ;;  %v404_v38 = vsel %vm402_vm2, %v401_v32, %v399_v13 }
  0x8b   : > { %v396_v39 = vmul.f32 %v872_v24, %v386_v35  ;;  %v397_v40 = vmul.f32 %v875_v25, %v387_v36  ;;  %v413_v41 = vmul.f32 %v881_v26, %v403_v37  ;;  %v414_v42 = vmul.f32 %v887_v27, %v404_v38 }
  0x8c   : > { %v448_v59 = vsel %vm442_vm5, %v428_v43, %v433_v45  ;;  %v447_v61 = vsel %vm442_vm5, %v346_v28, %v432_v44  ;;  %v930_v13 = vrot.slane %v844_v8, %v292_v63  ;;  %v949_v28 = vrot.slane %v839_v7, %v275_v6 }
  0x8d   : > { %v367_v46 = vpop.permute.xlu1 %366  ;;  %v365_v47 = vpop.permute.xlu0 %364  ;;  %v456_v48 = vpack.c.bf16 %v414_v42, %v414_v42  ;;  %v455_v49 = vpack.c.bf16 %v413_v41, %v413_v41  ;;  %v438_v50 = vrot.slane %v396_v39, 4  ;;  %v439_v53 = vrot.slane %v397_v40, 4 }
  0x8e   : > { %v369_v51 = vsel %vm368_vm3, %v365_v47, %v367_v46  ;;  %v370_v52 = vsel %vm368_vm3, %v367_v46, %v365_v47  ;;  %v964_v38 = vrot.slane %v839_v7, %v309_v20  ;;  %v967_v39 = vrot.slane %v844_v8, %v309_v20 }
  0x8f   : > { %v379_v54 = vmul.f32 %v892_v33, %v369_v51  ;;  %v380_v55 = vmul.f32 %v895_v34, %v370_v52  ;;  %723 = vmatprep.subr.msk.bf16.mxu0 %vm468_vm4, %v456_v48  ;;  %v470_v56 = vsel %vm468_vm4, %v455_v49, 0 }
  0x90   : > { %486 = vmatpush1.bf16.msra.mxu0 %v470_v56  ;;  %v457_v56 = vld [vmem:[%s1067_s2] sm:$0xf] }
  0x91   : > { %v286_v57 = vpop.permute.xlu1 %285  ;;  %v284_v58 = vpop.permute.xlu0 %283  ;;  %v450_v60 = vsel %vm442_vm5, %v380_v55, %v439_v53  ;;  %v449_v62 = vsel %vm442_vm5, %v379_v54, %v438_v50 }
  0x92   : > { %v454_v0 = vpack.c.bf16 %v450_v60, %v448_v59  ;;  %v453_v1 = vpack.c.bf16 %v449_v62, %v447_v61  ;;  %v288_v16 = vsel %vm287_vm6, %v284_v58, %v286_v57  ;;  %v289_v17 = vsel %vm287_vm6, %v286_v57, %v284_v58 }
  0x93   : > { %v298_v31 = vmul.f32 %v927_v12, %v289_v17  ;;  %v299_v5 = vmul.f32 %v930_v13, %v288_v16 }
  0x94   : > { %487 = vmatprep.subr.bf16.mxu0 %v454_v0 }
  0x95   : > { %v320_v3 = vpop.permute.xlu1 %319  ;;  %488 = vmatpush1.bf16.msra.mxu0 %v453_v1  ;;  %v318_v4 = vpop.permute.xlu0 %317  ;;  %v417_v44 = vrot.slane %v298_v31, 4  ;;  %v418_v45 = vrot.slane %v299_v5, 4 }
  0x96   : > { %v322_v21 = vsel %vm321_vm7, %v318_v4, %v320_v3  ;;  %v323_v22 = vsel %vm321_vm7, %v320_v3, %v318_v4 }
  0x97   : > { %v332_v36 = vmul.f32 %v933_v14, %v323_v22  ;;  %v333_v37 = vmul.f32 %v936_v15, %v322_v21 }
  0x99   : > { %v267_v23 = vpop.permute.xlu1 %266  ;;  %v265_v30 = vpop.permute.xlu0 %264  ;;  %v423_v48 = vrot.slane %v332_v36, 4  ;;  %v424_v7 = vrot.slane %v333_v37, 4 }
  0x9a   : > { %v271_v32 = vsel %vm270_vm8, %v265_v30, %v267_v23  ;;  %v272_v35 = vsel %vm270_vm8, %v267_v23, %v265_v30 }
  0x9b   : > { %v281_v40 = vmul.f32 %v949_v28, %v272_v35  ;;  %v282_v41 = vmul.f32 %v952_v29, %v271_v32 }
  0x9d   : > { %v303_v42 = vpop.permute.xlu1 %302  ;;  %v301_v43 = vpop.permute.xlu0 %300  ;;  %v444_v50 = vsel %vm442_vm5, %v282_v41, %v418_v45  ;;  %v443_v52 = vsel %vm442_vm5, %v281_v40, %v417_v44 }
  0x9e   : > { %v305_v46 = vsel %vm304_vm9, %v301_v43, %v303_v42  ;;  %v306_v47 = vsel %vm304_vm9, %v303_v42, %v301_v43 }
  0x9f   : > { %v315_v49 = vmul.f32 %v964_v38, %v306_v47  ;;  %v316_v8 = vmul.f32 %v967_v39, %v305_v46 }
  0xa1   : > { %v446_v51 = vsel %vm442_vm5, %v316_v8, %v424_v7  ;;  %v445_v53 = vsel %vm442_vm5, %v315_v49, %v423_v48 }
  0xa2   : > { %v452_v54 = vpack.c.bf16 %v446_v51, %v444_v50  ;;  %v451_v55 = vpack.c.bf16 %v445_v53, %v443_v52 }
  0xa4   : > { %489 = vmatprep.subr.bf16.mxu0 %v452_v54 }
  0xa5   : > { %490 = vmatpush1.bf16.msra.mxu0 %v451_v55 }
  0xa8   : > { %724 = vmatmul.mubr.msk.bf16.vlgmr.msra.gmra.mxu0 %vm464_vm10, %v457_v56 }
  0xaa   : > { %v462_v57 = vpop.permute.xlu0 %461 }
 0x168   : > { %v509_v58 = vpop.f32.mrf.mxu0 }
 0x169   : > { %v510_v59 = vadd.f32 %v509_v58, %v462_v57 }
 0x16a   : > { %v511_v60 = vpop.f32.mrf.mxu0 }
 0x16b   : > { %v516_v61 = vmax.f32 %v510_v59, 0.0  ;;  %v512_v62 = vadd.f32 %v511_v60, %v462_v57 }
 0x16c   : > { %v513_v63 = vpop.f32.mrf.mxu0 }
 0x16d   : > { %560 = vrot.lane.b32.xlu0 %v516_v61, %s759_s7  ;;  %576 = vrot.lane.b32.xlu1 %v516_v61, %s757_s29  ;;  %v517_v1 = vmax.f32 %v512_v62, 0.0 }
 0x16e   : > { %v514_v0 = vpop.f32.mrf.mxu0 }
 0x171   : > { %568 = vrot.lane.b32.xlu0 %v516_v61, %s758_s30  ;;  %578 = vrot.lane.b32.xlu1 %v517_v1, %s757_s29 }
 0x175   : > { %552 = vrot.lane.b32.xlu0 %v516_v61, %s756_s28  ;;  %562 = vrot.lane.b32.xlu1 %v517_v1, %s759_s7 }
 0x179   : > { %534 = vrot.lane.b32.xlu0 %v516_v61, %s764_s11  ;;  %570 = vrot.lane.b32.xlu1 %v517_v1, %s758_s30  ;;  %s720_s30 = sshll.u32 %s1073_s23, 3 }
 0x17d   : > { %542 = vrot.lane.b32.xlu0 %v516_v61, %s761_s9  ;;  %554 = vrot.lane.b32.xlu1 %v517_v1, %s756_s28 }
 0x181   : > { %518 = vrot.lane.b32.xlu0 %v516_v61, %s763_s10  ;;  %536 = vrot.lane.b32.xlu1 %v517_v1, %s764_s11 }
 0x185   : > { %526 = vrot.lane.b32.xlu0 %v516_v61, %s760_s8  ;;  %544 = vrot.lane.b32.xlu1 %v517_v1, %s761_s9  ;;  %s253_s9 = scalar_lea.vmem %s1071_s6, %s720_s30 }
 0x189   : > { %598 = vperm.xlu0 %746, %v595_v2   ;;  %520 = vrot.lane.b32.xlu1 %v517_v1, %s763_s10 }
 0x18d   : > { %528 = vrot.lane.b32.xlu1 %v517_v1, %s760_s8 }
 0x1df   : > { %v561_v3 = vpop.permute.xlu0 %560  ;;  %v577_v4 = vpop.permute.xlu1 %576 }
 0x1e3   : > { %v569_v6 = vpop.permute.xlu0 %568  ;;  %v579_v16 = vpop.permute.xlu1 %578 }
 0x1e4   : > { %v580_v17 = vsel %vm402_vm2, %v577_v4, %v579_v16  ;;  %v581_v20 = vsel %vm402_vm2, %v579_v16, %v577_v4 }
 0x1e5   : > { %v582_v21 = vmul.f32 %v881_v26, %v580_v17  ;;  %v583_v22 = vmul.f32 %v887_v27, %v581_v20 }
 0x1e7   : > { %v553_v23 = vpop.permute.xlu0 %552  ;;  %v563_v30 = vpop.permute.xlu1 %562  ;;  %v593_v31 = vpack.c.bf16 %v583_v22, %v583_v22  ;;  %v592_v5 = vpack.c.bf16 %v582_v21, %v582_v21 }
 0x1e8   : > { %v564_v35 = vsel %vm368_vm3, %v561_v3, %v563_v30  ;;  %v565_v36 = vsel %vm368_vm3, %v563_v30, %v561_v3 }
 0x1e9   : > { %725 = vmatprep.subr.msk.bf16.mxu1 %vm442_vm5, %v593_v31  ;;  %v606_v32 = vsel %vm442_vm5, %v592_v5, 0  ;;  %v566_v40 = vmul.f32 %v564_v35, %v892_v33  ;;  %v567_v41 = vmul.f32 %v565_v36, %v895_v34  ;;  %v551_v34 = vmul.f32 %v517_v1, %v852_v11 }
 0x1ea   : > { %618 = vmatpush1.bf16.msra.mxu1 %v606_v32 }
 0x1eb   : > { %v571_v37 = vpop.permute.xlu1 %570  ;;  %v535_v42 = vpop.permute.xlu0 %534 }
 0x1ec   : > { %v572_v26 = vsel %vm385_vm1, %v569_v6, %v571_v37  ;;  %v573_v27 = vsel %vm385_vm1, %v571_v37, %v569_v6  ;;  %v594_v6 = vld [vmem:[%s1069_s4] sm:$0xf] }
 0x1ed   : > { %v574_v43 = vmul.f32 %v572_v26, %v872_v24  ;;  %v575_v44 = vmul.f32 %v573_v27, %v875_v25  ;;  %v550_v24 = vmul.f32 %v516_v61, %v849_v10 }
 0x1ef   : > { %v555_v45 = vpop.permute.xlu1 %554  ;;  %v591_v46 = vpack.c.bf16 %v575_v44, %v567_v41  ;;  %v590_v47 = vpack.c.bf16 %v574_v43, %v566_v40  ;;  %v543_v25 = vpop.permute.xlu0 %542 }
 0x1f0   : > { %v556_v48 = vsel %vm351_vm0, %v553_v23, %v555_v45  ;;  %v557_v7 = vsel %vm351_vm0, %v555_v45, %v553_v23 }
 0x1f1   : > { %v558_v49 = vmul.f32 %v556_v48, %v860_v18  ;;  %v559_v33 = vmul.f32 %v557_v7, %v863_v19  ;;  %619 = vmatprep.subr.bf16.mxu1 %v591_v46 }
 0x1f2   : > { %620 = vmatpush1.bf16.msra.mxu1 %v590_v47 }
 0x1f3   : > { %v537_v8 = vpop.permute.xlu1 %536  ;;  %v589_v50 = vpack.c.bf16 %v559_v33, %v551_v34  ;;  %v588_v51 = vpack.c.bf16 %v558_v49, %v550_v24  ;;  %v519_v11 = vpop.permute.xlu0 %518 }
 0x1f4   : > { %v538_v52 = vsel %vm304_vm9, %v535_v42, %v537_v8  ;;  %v539_v53 = vsel %vm304_vm9, %v537_v8, %v535_v42 }
 0x1f5   : > { %621 = vmatprep.subr.bf16.mxu1 %v589_v50  ;;  %v540_v54 = vmul.f32 %v539_v53, %v964_v38  ;;  %v541_v55 = vmul.f32 %v538_v52, %v967_v39 }
 0x1f6   : > { %622 = vmatpush1.bf16.msra.mxu1 %v588_v51 }
 0x1f7   : > { %v545_v18 = vpop.permute.xlu1 %544  ;;  %v527_v63 = vpop.permute.xlu0 %526 }
 0x1f8   : > { %v546_v19 = vsel %vm321_vm7, %v543_v25, %v545_v18  ;;  %v547_v10 = vsel %vm321_vm7, %v545_v18, %v543_v25 }
 0x1f9   : > { %v548_v56 = vmul.f32 %v547_v10, %v933_v14  ;;  %v549_v57 = vmul.f32 %v546_v19, %v936_v15 }
 0x1fb   : > { %v521_v58 = vpop.permute.xlu1 %520  ;;  %v587_v59 = vpack.c.bf16 %v549_v57, %v541_v55  ;;  %v586_v60 = vpack.c.bf16 %v548_v56, %v540_v54 }
 0x1fc   : > { %v522_v61 = vsel %vm270_vm8, %v519_v11, %v521_v58  ;;  %v523_v62 = vsel %vm270_vm8, %v521_v58, %v519_v11 }
 0x1fd   : > { %623 = vmatprep.subr.bf16.mxu1 %v587_v59  ;;  %v524_v15 = vmul.f32 %v523_v62, %v949_v28  ;;  %v525_v0 = vmul.f32 %v522_v61, %v952_v29 }
 0x1fe   : > { %624 = vmatpush1.bf16.msra.mxu1 %v586_v60 }
 0x1ff   : > { %v529_v38 = vpop.permute.xlu1 %528 }
 0x200   : > { %v530_v39 = vsel %vm287_vm6, %v527_v63, %v529_v38  ;;  %v531_v14 = vsel %vm287_vm6, %v529_v38, %v527_v63 }
 0x201   : > { %v532_v1 = vmul.f32 %v531_v14, %v927_v12  ;;  %v533_v2 = vmul.f32 %v530_v39, %v930_v13 }
 0x203   : > { %v585_v3 = vpack.c.bf16 %v533_v2, %v525_v0  ;;  %v584_v4 = vpack.c.bf16 %v532_v1, %v524_v15 }
 0x204   : > { %v599_v9 = vpop.permute.xlu0 %598 }
 0x205   : > { %625 = vmatprep.subr.bf16.mxu1 %v585_v3 }
 0x206   : > { %626 = vmatpush1.bf16.msra.mxu1 %v584_v4 }
 0x209   : > { %726 = vmatmul.mubr.msk.bf16.vlgmr.msra.gmra.mxu1 %vm601_vm11, %v594_v6 }
 0x2c9   : > { %v645_v16 = vpop.f32.mrf.mxu1 }
 0x2ca   : > { %v646_v28 = vadd.f32 %v645_v16, %v599_v9 }
 0x2cb   : > { %v647_v12 = vpop.f32.mrf.mxu1 }
 0x2cc   : > { %v652_v13 = vmax.f32 %v646_v28, 0.0  ;;  %v648_v29 = vadd.f32 %v647_v12, %v599_v9 }
 0x2cd   : > { %v649_v17 = vpop.f32.mrf.mxu1 }
 0x2ce   : > { %654 = vst [vmem:[%s253_s9] sm:$0xff] %v652_v13  ;;  %v653_v20 = vmax.f32 %v648_v29, 0.0 }
 0x2cf   : > { %v650_v21 = vpop.f32.mrf.mxu1 }
 0x2d0   : > { %655 = vst [vmem:[%s253_s9 + $0x8] sm:$0xff] %v653_v20 }
 0x2d1 PF: > { %s16_s21 = sadd.s32 1, %s754_s21  }
 0x2d2   : > { %p13_p4 = scmp.ge.s32.totalorder %s16_s21, 4  }
 0x2d4   :  { %15 = sbr.rel (!%p13_p4) target bundleno = 1 (0x1), region = 74 }

</bundles_post_ra>
